<compile_context>
chip_gen: v7x
topology: tpu7x:2x2x1
jax: 0.10.0
libtpu: 0.0.40
codegen_flags: <defaults>
</compile_context>

<pallas_src>
import jax
import jax.numpy as jnp
from jax.experimental import pallas as pl
from jax.experimental.pallas import tpu as pltpu

_LANES = 128


def _cdiv(a, b):
    return (a + b - 1) // b


def _round_up(n, m):
    return _cdiv(n, m) * m


def bernoulli_net_kernel(x_ref, w1t_ref, bw_ref, b2_ref, out_ref):
    """One batch tile of BernoulliNet([in_dim, hidden]).

    x_ref  : (tb, in_dim)     streaming dtype (bf16 / f32)
    w1t_ref: (hidden, in_dim) streaming dtype (W1 transposed, resident)
    bw_ref : (hidden, 2) f32  col 0 = b1, col 1 = w2 (resident)
    b2_ref : (1, 1) f32 in SMEM
    out_ref: (1, tb) f32      lane-dense logits row for this tile
    """
    # Hidden layer, produced lane-dense as (hidden, tb): MXU "NT" matmul
    # contracting the last dim of both stored operands (same idiom as q @ k.T),
    # f32 accumulation.  This keeps the ELU / epilogue on full 128-lane vregs.
    h = jnp.dot(w1t_ref[...], x_ref[...].T, preferred_element_type=jnp.float32)

    b1 = bw_ref[:, 0:1]            # (hidden, 1) f32
    w2 = bw_ref[:, 1:2]            # (hidden, 1) f32
    z = h + b1
    # ELU(alpha=1).  min() keeps the untaken exp branch from overflowing on the
    # garbage rows of a ragged final block.  (jnp.expm1 would match torch a
    # hair closer for tiny negative inputs; exp is the guaranteed EUP lowering.)
    a = jnp.where(z > 0, z, jnp.exp(jnp.minimum(z, 0.0)) - 1.0)

    # Output Linear(hidden, 1): VPU multiply + sublane (XLU) reduction instead
    # of a 1-column MXU matmul; SMEM scalar bias + clamp fused in.  The result
    # is already the lane-dense (1, tb) output row.
    logits = jnp.sum(a * w2, axis=0, keepdims=True) + b2_ref[0, 0]
    out_ref[...] = jnp.clip(logits, -10.0, 10.0).astype(out_ref.dtype)


def pack_bernoulli_net_params(w1, b1, w2, b2, *, stream_dtype=jnp.bfloat16):
    """Pack BernoulliNet parameters once (hoisted out of the per-call path).

    w1: (in_dim, hidden)  (== torch Linear(in_dim, hidden).weight.T)
    b1: (hidden,) or (1, hidden)
    w2: (hidden, 1)       (== torch Linear(hidden, 1).weight.T)
    b2: scalar-shaped
    """
    in_dim, hidden = w1.shape
    w1t = jnp.asarray(w1).T.astype(stream_dtype)                  # (hidden, in_dim) MXU operand
    bw = jnp.stack(
        [jnp.reshape(b1, (hidden,)).astype(jnp.float32),
         jnp.reshape(w2, (hidden,)).astype(jnp.float32)],
        axis=1)                                                   # (hidden, 2) f32
    b2s = jnp.reshape(b2, (1, 1)).astype(jnp.float32)             # SMEM scalar
    return w1t, bw, b2s


def _pick_batch_tile(batch, in_dim, hidden, stream_itemsize, block_batch,
                     vmem_budget_bytes):
    # Tile stays a multiple of 128 so the transposed hidden layout and the
    # (1, tb) output row stay lane-dense / unmasked.
    tb = _round_up(max(min(block_batch, batch), 1), _LANES)
    # Keep >= 2 grid steps when the batch spans more than one minimal tile so
    # the "parallel" grid axis can shard across v7x's two TensorCores.
    if batch > _LANES and _cdiv(batch, tb) < 2:
        tb = max(_LANES, _round_up(_cdiv(batch, 2), _LANES))

    def vmem_bytes(t):
        x_buf = 2 * t * in_dim * stream_itemsize            # double-buffered x tile
        w_buf = 2 * (hidden * in_dim * stream_itemsize      # W1^T slab
                     + hidden * 2 * 4)                      # (b1, w2) slab, f32
        o_buf = 2 * t * 4                                   # double-buffered (1, tb) out row
        return x_buf + w_buf + o_buf

    # VMEM guardrail (v7x: 64 MiB physical / 32 MiB scoped default).
    while vmem_bytes(tb) > vmem_budget_bytes and tb > _LANES:
        tb = max(_LANES, _round_up(tb // 2, _LANES))
    return tb, vmem_bytes(tb)


def bernoulli_net_apply(x, packed_params, *, block_batch=4096,
                        vmem_budget_bytes=40 << 20, params_buffer_count=None):
    """BernoulliNet forward on pre-packed params.  Returns (logits,) of shape (batch, 1)."""
    w1t, bw, b2s = packed_params
    batch, in_dim = x.shape
    hidden, in_dim_p = w1t.shape
    assert in_dim_p == in_dim, (in_dim_p, in_dim)
    stream_dtype = w1t.dtype
    if x.dtype != stream_dtype:
        # Only cast when needed; upstream should ideally already produce x in
        # the streaming dtype so this is a no-op.
        x = x.astype(stream_dtype)

    tb, vmem_use = _pick_batch_tile(batch, in_dim, hidden,
                                    jnp.dtype(stream_dtype).itemsize,
                                    block_batch, vmem_budget_bytes)
    n_tiles = _cdiv(batch, tb)   # ragged final block handled by Pallas; no jnp.pad copy of x

    # Resident parameter slabs (constant index_map).  params_buffer_count=1
    # single-buffers them (VMEM saving for large hidden nets, per review).
    p_kwargs = {}
    if params_buffer_count is not None:
        p_kwargs["pipeline_mode"] = pl.Buffered(params_buffer_count)

    cp_kwargs = dict(dimension_semantics=("parallel",))
    vmem_need = vmem_use + (1 << 20)
    if vmem_need > (16 << 20):           # above the smallest (v5e) scoped default
        cp_kwargs["vmem_limit_bytes"] = vmem_need

    out = pl.pallas_call(
        bernoulli_net_kernel,
        out_shape=jax.ShapeDtypeStruct((n_tiles, tb), jnp.float32),
        grid=(n_tiles,),
        in_specs=[
            pl.BlockSpec((tb, in_dim), lambda i: (i, 0)),                  # x tile (streamed)
            pl.BlockSpec((hidden, in_dim), lambda i: (0, 0), **p_kwargs),  # W1^T (resident)
            pl.BlockSpec((hidden, 2), lambda i: (0, 0), **p_kwargs),       # (b1, w2) (resident)
            pl.BlockSpec((1, 1), lambda i: (0, 0),
                         memory_space=pltpu.MemorySpace.SMEM),             # b2 scalar
        ],
        out_specs=pl.BlockSpec((1, tb), lambda i: (i, 0)),                 # lane-dense out row
        compiler_params=pltpu.CompilerParams(**cp_kwargs),
    )(x, w1t, bw, b2s)

    logits = out.reshape(n_tiles * tb, 1)[:batch]
    return (logits,)


def bernoulli_net_forward(x, w1, b1, w2, b2, *, stream_dtype=jnp.bfloat16, **kwargs):
    """Convenience wrapper (packs per call).  Prefer packing once with
    pack_bernoulli_net_params() and reusing it via bernoulli_net_apply()."""
    packed = pack_bernoulli_net_params(w1, b1, w2, b2, stream_dtype=stream_dtype)
    return bernoulli_net_apply(x, packed, **kwargs)


def _ref_forward(x, w1, b1, w2, b2):
    x = x.astype(jnp.float32)
    h = x @ w1.astype(jnp.float32) + jnp.reshape(b1, (1, -1)).astype(jnp.float32)
    h = jnp.where(h > 0, h, jnp.exp(h) - 1.0)
    out = h @ jnp.reshape(w2, (-1, 1)).astype(jnp.float32) \
        + jnp.reshape(b2, (1, 1)).astype(jnp.float32)
    return jnp.clip(out, -10.0, 10.0)


if __name__ == "__main__":
    # BernoulliNet(sizes=[32, 16]) -> Linear(32, 16), ELU, Linear(16, 1)
    in_dim, hidden, batch = 32, 16, 8

    key = jax.random.PRNGKey(0)
    k_x, k_w1, k_b1, k_w2, k_b2, k_x2, k_x3 = jax.random.split(key, 7)

    x = jax.random.normal(k_x, (batch, in_dim), dtype=jnp.float32)

    # Deterministic parameter init mirroring torch.nn.Linear's default scheme.
    lim1 = 1.0 / jnp.sqrt(jnp.float32(in_dim))
    lim2 = 1.0 / jnp.sqrt(jnp.float32(hidden))
    w1 = jax.random.uniform(k_w1, (in_dim, hidden), jnp.float32, -lim1, lim1)
    b1 = jax.random.uniform(k_b1, (hidden,), jnp.float32, -lim1, lim1)
    w2 = jax.random.uniform(k_w2, (hidden, 1), jnp.float32, -lim2, lim2)
    b2 = jax.random.uniform(k_b2, (1,), jnp.float32, -lim2, lim2)

    # --- exact-precision path (f32 streaming), single tile --------------------
    packed_f32 = pack_bernoulli_net_params(w1, b1, w2, b2, stream_dtype=jnp.float32)
    (logits,) = bernoulli_net_apply(x, packed_f32)
    jax.block_until_ready(logits)
    ref = _ref_forward(x, w1, b1, w2, b2)
    assert logits.shape == (batch, 1)
    assert jnp.allclose(logits, ref, atol=1e-5, rtol=1e-5)

    # --- default bf16-streaming path + ragged batch (partial final block) -----
    packed_bf16 = pack_bernoulli_net_params(w1, b1, w2, b2)   # packed once, reused per call
    x_odd = jax.random.normal(k_x2, (5, in_dim), dtype=jnp.float32)
    (logits_odd,) = bernoulli_net_apply(x_odd, packed_bf16)
    jax.block_until_ready(logits_odd)
    ref_odd = _ref_forward(x_odd.astype(jnp.bfloat16).astype(jnp.float32),
                           w1.astype(jnp.bfloat16).astype(jnp.float32), b1, w2, b2)
    assert logits_odd.shape == (5, 1)
    assert jnp.allclose(logits_odd, ref_odd, atol=2e-3, rtol=2e-3)

    # --- multi-tile "parallel" grid with a partial final block ----------------
    x_big = jax.random.normal(k_x3, (272, in_dim), dtype=jnp.float32)
    (logits_big,) = bernoulli_net_apply(x_big, packed_f32, block_batch=128)
    jax.block_until_ready(logits_big)
    ref_big = _ref_forward(x_big, w1, b1, w2, b2)
    assert logits_big.shape == (272, 1)
    assert jnp.allclose(logits_big, ref_big, atol=1e-5, rtol=1e-5)

    print("KERNEL_OK")
</pallas_src>

<mosaic_0001>
module attributes {stable_mosaic.version = 11 : i64} {
  func.func @bernoulli_net_kernel(%arg0: i32, %arg1: memref<128x32xf32, #tpu.memory_space<vmem>>, %arg2: memref<16x32xf32, #tpu.memory_space<vmem>>, %arg3: memref<16x2xf32, #tpu.memory_space<vmem>>, %arg4: memref<1x1xf32, #tpu.memory_space<smem>>, %arg5: memref<1x128xf32, #tpu.memory_space<vmem>>) attributes {dimension_semantics = [#tpu.dimension_semantics<parallel>], iteration_bounds = array<i64: 1>, scalar_prefetch = 0 : i64, scratch_operands = 0 : i64, tpu.core_type = #tpu.core_type<tc>, window_params = [{transform_indices = @transform_0, window_bounds = array<i64: 128, 32>}, {pipeline_mode = #tpu.pipeline_mode<synchronous>, transform_indices = @transform_1, window_bounds = array<i64: 16, 32>}, {pipeline_mode = #tpu.pipeline_mode<synchronous>, transform_indices = @transform_2, window_bounds = array<i64: 16, 2>}, {transform_indices = @transform_3, window_bounds = array<i64: 1, 1>}, {transform_indices = @transform_4, window_bounds = array<i64: 1, 128>}]} {
    %c0 = arith.constant 0 : index
    %c0_0 = arith.constant 0 : index
    %0 = vector.load %arg2[%c0, %c0_0] : memref<16x32xf32, #tpu.memory_space<vmem>>, vector<16x32xf32>
    %c0_1 = arith.constant 0 : index
    %c0_2 = arith.constant 0 : index
    %1 = vector.load %arg1[%c0_1, %c0_2] : memref<128x32xf32, #tpu.memory_space<vmem>>, vector<128x32xf32>
    %2 = tpu.transpose %1, [1, 0] : vector<128x32xf32> -> vector<32x128xf32>
    %cst = arith.constant dense<0.000000e+00> : vector<16x128xf32>
    %3 = tpu.matmul %0, %2, %cst {dimension_numbers = #tpu.dot_dimension_numbers<[1], [0], [0], [1], [0, 0, 1, 1], [], []>} : vector<16x32xf32>, vector<32x128xf32>, vector<16x128xf32> -> vector<16x128xf32>
    %c0_3 = arith.constant 0 : index
    %c0_4 = arith.constant 0 : index
    %4 = vector.load %arg3[%c0_3, %c0_4] : memref<16x2xf32, #tpu.memory_space<vmem>>, vector<16x1xf32>
    %c0_5 = arith.constant 0 : index
    %c1 = arith.constant 1 : index
    %5 = vector.load %arg3[%c0_5, %c1] : memref<16x2xf32, #tpu.memory_space<vmem>>, vector<16x1xf32>
    %6 = vector.broadcast %4 : vector<16x1xf32> to vector<16x128xf32>
    %7 = arith.addf %3, %6 : vector<16x128xf32>
    %cst_6 = arith.constant 0.000000e+00 : f32
    %8 = vector.broadcast %cst_6 : f32 to vector<16x128xf32>
    %9 = arith.cmpf ogt, %7, %8 : vector<16x128xf32>
    %cst_7 = arith.constant 0.000000e+00 : f32
    %10 = vector.broadcast %cst_7 : f32 to vector<16x128xf32>
    %11 = arith.minimumf %7, %10 : vector<16x128xf32>
    %12 = math.exp %11 : vector<16x128xf32>
    %cst_8 = arith.constant 1.000000e+00 : f32
    %13 = vector.broadcast %cst_8 : f32 to vector<16x128xf32>
    %14 = arith.subf %12, %13 : vector<16x128xf32>
    %15 = arith.select %9, %7, %14 : vector<16x128xi1>, vector<16x128xf32>
    %16 = vector.broadcast %5 : vector<16x1xf32> to vector<16x128xf32>
    %17 = arith.mulf %15, %16 : vector<16x128xf32>
    %cst_9 = arith.constant dense<0.000000e+00> : vector<128xf32>
    %18 = vector.multi_reduction <add>, %17, %cst_9 [0] : vector<16x128xf32> to vector<128xf32>
    %19 = vector.shape_cast %18 : vector<128xf32> to vector<1x128xf32>
    %c0_10 = arith.constant 0 : index
    %c0_11 = arith.constant 0 : index
    %20 = memref.load %arg4[%c0_10, %c0_11] : memref<1x1xf32, #tpu.memory_space<smem>>
    %21 = vector.broadcast %20 : f32 to vector<1x128xf32>
    %22 = arith.addf %19, %21 : vector<1x128xf32>
    %cst_12 = arith.constant -1.000000e+01 : f32
    %cst_13 = arith.constant 1.000000e+01 : f32
    %23 = vector.broadcast %cst_12 : f32 to vector<1x128xf32>
    %24 = arith.maximumf %23, %22 : vector<1x128xf32>
    %25 = vector.broadcast %cst_13 : f32 to vector<1x128xf32>
    %26 = arith.minimumf %25, %24 : vector<1x128xf32>
    %c0_14 = arith.constant 0 : index
    %c0_15 = arith.constant 0 : index
    %27 = vector.load %arg5[%c0_14, %c0_15] : memref<1x128xf32, #tpu.memory_space<vmem>>, vector<1x128xf32>
    tpu.vector_store %arg5[%c0_14, %c0_15], %26 {strides = array<i32>} : memref<1x128xf32, #tpu.memory_space<vmem>>, vector<1x128xf32>,
    return
  }
  func.func @transform_0(%arg0: i32) -> (i32, i32) {
    %c0_i32 = arith.constant 0 : i32
    %c0_i32_0 = arith.constant 0 : i32
    return %arg0, %c0_i32 : i32, i32
  }
  func.func @transform_1(%arg0: i32) -> (i32, i32) {
    %c0_i32 = arith.constant 0 : i32
    %c0_i32_0 = arith.constant 0 : i32
    %c0_i32_1 = arith.constant 0 : i32
    return %c0_i32, %c0_i32_0 : i32, i32
  }
  func.func @transform_2(%arg0: i32) -> (i32, i32) {
    %c0_i32 = arith.constant 0 : i32
    %c0_i32_0 = arith.constant 0 : i32
    %c0_i32_1 = arith.constant 0 : i32
    return %c0_i32, %c0_i32_0 : i32, i32
  }
  func.func @transform_3(%arg0: i32) -> (i32, i32) {
    %c0_i32 = arith.constant 0 : i32
    %c0_i32_0 = arith.constant 0 : i32
    %c0_i32_1 = arith.constant 0 : i32
    return %c0_i32, %c0_i32_0 : i32, i32
  }
  func.func @transform_4(%arg0: i32) -> (i32, i32) {
    %c0_i32 = arith.constant 0 : i32
    %c0_i32_0 = arith.constant 0 : i32
    return %arg0, %c0_i32 : i32, i32
  }
}

</mosaic_0001>

<bundles_post_ra>
// kernel: tpu_custom_call.1
= control target key start
LH: loop header
LB: loop body
LE: loop exit
PB: predicated region body
PF: predicated region fallthrough
CT: control target
= control target key end

     0   :  { %vm49_vm0 = vcmask 261120   ;;  %v384_v6 = vmov 0   ;;  %v385_v7 = vmov 1   ;;  %s527_s0 = inlined_call_operand.vmem [shape: f32[8,32], index: 0, kind: input, shape index: {}]   ;;  %s528_s1 = inlined_call_operand.vmem [shape: f32[16,32], index: 1, kind: input, shape index: {}]   ;;  %s529_s2 = inlined_call_operand.vmem [shape: f32[16,2], index: 2, kind: input, shape index: {}]   ;;  %s530_s3 = inlined_call_operand.<no memory space> [shape: f32[1,1], index: 3, kind: input, shape index: {}]   ;;  %s531_s4 = inlined_call_operand.hbm [shape: f32[1,128], index: 4, kind: output, shape index: {}]  }
   0x1   :  { %v21_v0 = vld [vmem:[%s527_s0] sm:$0xff]  ;;  %v22_v1 = vld [vmem:[%s527_s0 + $0x8] sm:$0xff]  ;;  %v23_v2 = vld [vmem:[%s527_s0 + $0x10] sm:$0xff]  ;;  %353 = vset.pattern.permute.xlu0 %v384_v6  ;;  %354 = vset.pattern.permute.xlu1 %v385_v7 }
   0x2   :  { %v302_v3 = vpack.c.bf16 %v22_v1, %v21_v0  ;;  %vm423_vm1 = vmpackc.low %vm49_vm0, %vm49_vm0  ;;  %v24_v5 = vld [vmem:[%s527_s0 + $0x18] sm:$0xff]  ;;  %v19_v9 = vld [vmem:[%s528_s1] sm:$0xff] }
   0x3   :  { %v308_v8 = vpack.c.bf16 %v24_v5, %v23_v2  ;;  %v25_v10 = vld [vmem:[%s527_s0 + $0x20] sm:$0xff]  ;;  %v26_v11 = vld [vmem:[%s527_s0 + $0x28] sm:$0xff]  ;;  %299 = vmatprep.mubr.msk.f32.mxu0 %vm49_vm0, %v19_v9 }
   0x4   :  { %304 = vmatprep.subr.msk.bf16.mxu0 %vm423_vm1, %v302_v3  ;;  %v37_v12 = vld [vmem:[%s529_s2] sm:$0xff] }
   0x5   :  { %307 = vmatpush3.bf16.xpose.msk.msra.mxu0 %vm423_vm1, %v302_v3  ;;  %41 = vperm.xlu0 %353, %v37_v12  }
   0x6   :  { %310 = vmatprep.subr.msk.bf16.mxu0 %vm423_vm1, %v308_v8  ;;  %192 = vperm.xlu1 %354, %v37_v12  }
   0x7   :  { %10 = vsyncpa [#allocation4], 0  ;;  %v38_v13 = vld [vmem:[%s529_s2 + $0x8] sm:$0xff]  ;;  %v314_v14 = vpack.c.bf16 %v26_v11, %v25_v10  ;;  %v27_v15 = vld [vmem:[%s527_s0 + $0x30] sm:$0xff]  ;;  %v209_v57 = vstv %s530_s3  ;;  %s386_s28 = smov [#allocation3]  }
   0x8   :  { %v28_v16 = vld [vmem:[%s527_s0 + $0x38] sm:$0xff]  ;;  %v29_v18 = vld [vmem:[%s527_s0 + $0x40] sm:$0xff]  ;;  %v30_v19 = vld [vmem:[%s527_s0 + $0x48] sm:$0xff]  ;;  %s220_s29 = sshll.u32 %s386_s28, 4  ;;  %s221_s29 = int_to_ptr.vmem [resolvable:$true] %s220_s29 }
   0x9   :  { %46 = vperm.xlu0 %353, %v38_v13   ;;  %v320_v17 = vpack.c.bf16 %v28_v16, %v27_v15  ;;  %v326_v20 = vpack.c.bf16 %v30_v19, %v29_v18  ;;  %v31_v21 = vld [vmem:[%s527_s0 + $0x50] sm:$0xff]  ;;  %v32_v22 = vld [vmem:[%s527_s0 + $0x58] sm:$0xff]  ;;  %v33_v24 = vld [vmem:[%s527_s0 + $0x60] sm:$0xff]  ;;  %s360_s30 = scalar_lea.vmem %s221_s29, 16  ;;  %s364_s5 = scalar_lea.vmem %s221_s29, 32 }
   0xa   :  { %196 = vperm.xlu1 %354, %v38_v13   ;;  %v332_v23 = vpack.c.bf16 %v32_v22, %v31_v21  ;;  %v34_v25 = vld [vmem:[%s527_s0 + $0x68] sm:$0xff]  ;;  %v35_v27 = vld [vmem:[%s527_s0 + $0x70] sm:$0xff]  ;;  %v36_v28 = vld [vmem:[%s527_s0 + $0x78] sm:$0xff]  ;;  %p361_p0 = scmp.ne.s32.totalorder %s221_s29, %s360_s30  ;;  %p365_p1 = scmp.lt.s32.totalorder %s221_s29, %s221_s29 }
   0xb   :  { %v338_v26 = vpack.c.bf16 %v34_v25, %v33_v24  ;;  %v344_v29 = vpack.c.bf16 %v36_v28, %v35_v27  ;;  %v20_v30 = vld [vmem:[%s528_s1 + $0x8] sm:$0xff]  ;;  %p366_p2 = scmp.lt.s32.totalorder %s364_s5, %s360_s30 }
   0xd   :  { %313 = vmatpush3.bf16.xpose.msk.msra.mxu0 %vm423_vm1, %v308_v8  ;;  %355 = vset.pattern.permute.xlu0 %v385_v7  ;;  %p367_p3 = por %p366_p2, %p365_p1 }
   0xe   :  { %316 = vmatprep.subr.msk.bf16.mxu0 %vm423_vm1, %v314_v14 }
   0xf   :  { %p368_p4 = pnand %p367_p3, %p361_p0 }
  0x15   :  { %319 = vmatpush3.bf16.xpose.msk.msra.mxu0 %vm423_vm1, %v314_v14 }
  0x16   :  { %322 = vmatprep.subr.msk.bf16.mxu0 %vm423_vm1, %v320_v17 }
  0x1d   :  { %325 = vmatpush3.bf16.xpose.msk.msra.mxu0 %vm423_vm1, %v320_v17 }
  0x1e   :  { %328 = vmatprep.subr.msk.bf16.mxu0 %vm423_vm1, %v326_v20 }
  0x25   :  { %331 = vmatpush3.bf16.xpose.msk.msra.mxu0 %vm423_vm1, %v326_v20 }
  0x26   :  { %334 = vmatprep.subr.msk.bf16.mxu0 %vm423_vm1, %v332_v23 }
  0x2d   :  { %337 = vmatpush3.bf16.xpose.msk.msra.mxu0 %vm423_vm1, %v332_v23 }
  0x2e   :  { %340 = vmatprep.subr.msk.bf16.mxu0 %vm423_vm1, %v338_v26 }
  0x35   :  { %343 = vmatpush3.bf16.xpose.msk.msra.mxu0 %vm423_vm1, %v338_v26 }
  0x36   :  { %346 = vmatprep.subr.msk.bf16.mxu0 %vm423_vm1, %v344_v29 }
  0x3d   :  { %349 = vmatpush3.bf16.xpose.msk.msra.mxu0 %vm423_vm1, %v344_v29 }
  0x44   :  { %300 = vmatmul.mubr.msk.f32.vlgmr.msra.gmra.mrb[0].mxu0 %vm49_vm0, %v20_v30 }
  0x84   :  { %v42_v31 = vpop.permute.xlu0 %41 }
  0x85   :  { %v193_v41 = vpop.permute.xlu1 %192 }
  0x88   :  { %v47_v32 = vpop.permute.xlu0 %46 }
  0x89   :  { %v197_v46 = vpop.permute.xlu1 %196 }
 0x117   :  { %v301_v33 = vpop.f32.mrb[0].mxu0 }
 0x118   :  { %v176_v34 = vadd.f32 %v301_v33, %v47_v32  ;;  %v170_v35 = vpop.f32.mrb[1].mxu0 }
 0x119   :  { %v171_v36 = vadd.f32 %v170_v35, %v42_v31 }
 0x11a   :  { %v182_v37 = vmin.f32 %v176_v34, 0.0  ;;  %vm180_vm2 = vcmp.gt.f32.partialorder %v176_v34, 0.0 }
 0x11b   :  { %v181_v38 = vmin.f32 %v171_v36, 0.0  ;;  %vm179_vm3 = vcmp.gt.f32.partialorder %v171_v36, 0.0 }
 0x11c   :  { %v185_v39 = vmul.f32 1.442695, %v182_v37 }
 0x11d   :  { %v183_v40 = vmul.f32 1.442695, %v181_v38 }
 0x11e   :  { %356 = vpow2.f32 %v185_v39 }
 0x11f   :  { %358 = vpow2.f32 %v183_v40 }
 0x128   :  { %v357_v42 = vpop.eup %356 }
 0x129   :  { %v359_v43 = vpop.eup %358  ;;  %v247_v44 = vadd.f32 -1.0, %v357_v42 }
 0x12a   :  { %v246_v45 = vadd.f32 -1.0, %v359_v43 }
 0x12b   :  { %v190_v47 = vsel %vm180_vm2, %v176_v34, %v247_v44 }
 0x12c   :  { %v189_v48 = vsel %vm179_vm3, %v171_v36, %v246_v45  ;;  %v200_v49 = vmul.f32 %v197_v46, %v190_v47 }
 0x12d   :  { %v199_v50 = vmul.f32 %v193_v41, %v189_v48 }
 0x12f   :  { %v201_v51 = vadd.f32 %v200_v49, %v199_v50 }
 0x131   :  { %v202_v52 = vrot.slane %v201_v51, 4 }
 0x133   :  { %v203_v53 = vadd.f32 %v202_v52, %v201_v51 }
 0x135   :  { %v204_v54 = vrot.slane %v203_v53, 2 }
 0x137   :  { %v205_v55 = vadd.f32 %v204_v54, %v203_v53 }
 0x139   :  { %v206_v56 = vrot.slane %v205_v55, 1 }
 0x13b   :  { %v207_v58 = vadd.f32 %v206_v56, %v205_v55 }
 0x13d   :  { %v210_v59 = vadd.f32 %v209_v57, %v207_v58 }
 0x13f   :  { %v248_v60 = vclamps-f32 %v210_v59, 10.0 }
 0x141   :  { %213 = vst [vmem:[#allocation3] sm:$0x1] %v248_v60 }
 0x142   :  { %371 = shalt.err (!%p368_p4)
}
 0x143   :  { %s372_s8 = scalar_lea.hbm %s531_s4, 16 }
 0x144   :  { %p373_p5 = scmp.ne.s32.totalorder %s531_s4, %s372_s8  ;;  %p376_p6 = scmp.lt.u32.totalorder %s372_s8, %s531_s4 }
 0x146   :  { %p378_p7 = pnand %p376_p6, %p373_p5 }
 0x148   :  { %381 = shalt.err (!%p378_p7)
}
 0x149   :  { %223 = dma.vmem_to_hbm [thread:$0]  %s221_s29, 16, %s531_s4, [#allocation4]  }
 0x14a   :  { %382 = dma.done.wait [#allocation4], 16  }
 0x14b   :  { %383 = vsyncadd [#allocation4], 4294967280 }
 0x14c   :  { %227 = vsyncpa [#allocation4], 1 }

</bundles_post_ra>
